<compile_context>
chip_gen: v7x
topology: tpu7x:2x2x1
jax: 0.10.0
libtpu: 0.0.40
codegen_flags: <defaults>
</compile_context>

<pallas_src>
import jax
import jax.numpy as jnp
from jax.experimental import pallas as pl
from jax.experimental.pallas import tpu as pltpu

HIDDEN = 30            # fixed by the module definition
DEFAULT_TILE_B = 2048  # safe across v5e / v6e / v7x VMEM budgets


def _bpnet_kernel(x_ref, w1_ref, b1_ref, w2_ref, b2_ref, out_ref):
    # One batch tile per grid step: fused matmul -> bias -> relu -> matmul -> bias.
    x = x_ref[...]                                        # (TILE_B, In)   f32 or bf16
    h = jnp.dot(x, w1_ref[...],
                preferred_element_type=jnp.float32)       # (TILE_B, 30)   f32 acc on MXU
    h = h + b1_ref[...].astype(jnp.float32)               # implicit (1, 30) broadcast
    h = jnp.maximum(h, 0.0)                               # ReLU on VPU (f32)
    q = jnp.dot(h.astype(w2_ref.dtype), w2_ref[...],
                preferred_element_type=jnp.float32)       # (TILE_B, Out)  f32 acc
    q = q + b2_ref[...].astype(jnp.float32)               # implicit (1, Out) broadcast
    out_ref[...] = q.astype(out_ref.dtype)                # narrow masked store is fine


def bpnet_forward(x, w1, b1, w2, b2, *, tile_b=DEFAULT_TILE_B):
    """Fused forward pass.  x: (B, In) -> (B, Out) f32.

    x / w1 / w2 may be f32 or bf16; accumulation is always f32.
    """
    batch, in_size = x.shape
    out_size = w2.shape[1]

    # Sublane alignment: 8 rows for 4-byte dtypes, 16 for 2-byte (bf16 packing).
    align = 16 if jnp.dtype(x.dtype).itemsize == 2 else 8
    tile_b = max(align, min(tile_b, pl.cdiv(batch, align) * align))
    tile_b = pl.cdiv(tile_b, align) * align

    padded = pl.cdiv(batch, tile_b) * tile_b
    if padded != batch:
        x = jnp.pad(x, ((0, padded - batch), (0, 0)))     # zero rows; sliced off below

    grid = (padded // tile_b,)

    out = pl.pallas_call(
        _bpnet_kernel,
        out_shape=jax.ShapeDtypeStruct((padded, out_size), jnp.float32),
        grid=grid,
        in_specs=[
            # Batch-tiled activations: new block per grid step -> pipelined DMA.
            pl.BlockSpec((tile_b, in_size), lambda i: (i, 0)),
            # Weights/biases: constant index_map -> loaded once, VMEM-resident.
            pl.BlockSpec(w1.shape, lambda i: (0, 0)),
            pl.BlockSpec(b1.shape, lambda i: (0, 0)),
            pl.BlockSpec(w2.shape, lambda i: (0, 0)),
            pl.BlockSpec(b2.shape, lambda i: (0, 0)),
        ],
        out_specs=pl.BlockSpec((tile_b, out_size), lambda i: (i, 0)),
        compiler_params=pltpu.CompilerParams(
            # Independent batch tiles -> shardable across v7x's two TensorCores.
            dimension_semantics=("parallel",),
        ),
    )(x, w1, b1, w2, b2)

    return out[:batch] if padded != batch else out


def init_bpnet_params(key, input_size, output_size):
    """Deterministic PyTorch-style init: U(-1/sqrt(fan_in), 1/sqrt(fan_in))."""
    k1, k2, k3, k4 = jax.random.split(key, 4)
    lim1 = 1.0 / jnp.sqrt(jnp.float32(input_size))
    lim2 = 1.0 / jnp.sqrt(jnp.float32(HIDDEN))
    # Stored as (in_features, out_features) = transpose of torch's weight.
    w1 = jax.random.uniform(k1, (input_size, HIDDEN), jnp.float32, -lim1, lim1)
    b1 = jax.random.uniform(k2, (1, HIDDEN), jnp.float32, -lim1, lim1)
    w2 = jax.random.uniform(k3, (HIDDEN, output_size), jnp.float32, -lim2, lim2)
    b2 = jax.random.uniform(k4, (1, output_size), jnp.float32, -lim2, lim2)
    return w1, b1, w2, b2


def bpnet_ref(x, w1, b1, w2, b2):
    """Pure-JAX reference mirroring the kernel's dtype/accumulation choices."""
    h = jnp.dot(x, w1, preferred_element_type=jnp.float32) + b1.astype(jnp.float32)
    h = jnp.maximum(h, 0.0)
    q = jnp.dot(h.astype(w2.dtype), w2, preferred_element_type=jnp.float32)
    return q + b2.astype(jnp.float32)


if __name__ == "__main__":
    key = jax.random.PRNGKey(0)
    k_params, k_x1, k_x2, k_x3 = jax.random.split(key, 4)

    input_size, output_size = 32, 4
    w1, b1, w2, b2 = init_bpnet_params(k_params, input_size, output_size)

    # 1) Small f32 batch (single tile path).
    x8 = jax.random.normal(k_x1, (8, input_size), jnp.float32)
    q8 = jax.block_until_ready(bpnet_forward(x8, w1, b1, w2, b2))
    assert q8.shape == (8, output_size)
    assert jnp.allclose(q8, bpnet_ref(x8, w1, b1, w2, b2), atol=1e-4, rtol=1e-4)

    # 2) Ragged batch (not a multiple of the sublane/tile) -> pad + slice path.
    x37 = jax.random.normal(k_x2, (37, input_size), jnp.float32)
    q37 = jax.block_until_ready(bpnet_forward(x37, w1, b1, w2, b2))
    assert q37.shape == (37, output_size)
    assert jnp.allclose(q37, bpnet_ref(x37, w1, b1, w2, b2), atol=1e-4, rtol=1e-4)

    # 3) bf16-in-HBM storage for x / weights (halves HBM read traffic), f32 accum.
    x64 = jax.random.normal(k_x3, (64, input_size), jnp.float32)
    x_bf, w1_bf, w2_bf = (a.astype(jnp.bfloat16) for a in (x64, w1, w2))
    q_bf = jax.block_until_ready(bpnet_forward(x_bf, w1_bf, b1, w2_bf, b2))
    assert q_bf.shape == (64, output_size)
    assert jnp.allclose(q_bf, bpnet_ref(x_bf, w1_bf, b1, w2_bf, b2),
                        atol=2e-2, rtol=2e-2)

    print("KERNEL_OK")
</pallas_src>

<mosaic_0001>
module attributes {stable_mosaic.version = 11 : i64} {
  func.func @_bpnet_kernel(%arg0: i32, %arg1: memref<8x32xf32, #tpu.memory_space<vmem>>, %arg2: memref<32x30xf32, #tpu.memory_space<vmem>>, %arg3: memref<1x30xf32, #tpu.memory_space<vmem>>, %arg4: memref<30x4xf32, #tpu.memory_space<vmem>>, %arg5: memref<1x4xf32, #tpu.memory_space<vmem>>, %arg6: memref<8x4xf32, #tpu.memory_space<vmem>>) attributes {dimension_semantics = [#tpu.dimension_semantics<parallel>], iteration_bounds = array<i64: 1>, scalar_prefetch = 0 : i64, scratch_operands = 0 : i64, tpu.core_type = #tpu.core_type<tc>, window_params = [{transform_indices = @transform_0, window_bounds = array<i64: 8, 32>}, {pipeline_mode = #tpu.pipeline_mode<synchronous>, transform_indices = @transform_1, window_bounds = array<i64: 32, 30>}, {pipeline_mode = #tpu.pipeline_mode<synchronous>, transform_indices = @transform_2, window_bounds = array<i64: 1, 30>}, {pipeline_mode = #tpu.pipeline_mode<synchronous>, transform_indices = @transform_3, window_bounds = array<i64: 30, 4>}, {pipeline_mode = #tpu.pipeline_mode<synchronous>, transform_indices = @transform_4, window_bounds = array<i64: 1, 4>}, {transform_indices = @transform_5, window_bounds = array<i64: 8, 4>}]} {
    %c0 = arith.constant 0 : index
    %c0_0 = arith.constant 0 : index
    %0 = vector.load %arg1[%c0, %c0_0] : memref<8x32xf32, #tpu.memory_space<vmem>>, vector<8x32xf32>
    %c0_1 = arith.constant 0 : index
    %c0_2 = arith.constant 0 : index
    %1 = vector.load %arg2[%c0_1, %c0_2] : memref<32x30xf32, #tpu.memory_space<vmem>>, vector<32x30xf32>
    %cst = arith.constant dense<0.000000e+00> : vector<8x30xf32>
    %2 = tpu.matmul %0, %1, %cst {dimension_numbers = #tpu.dot_dimension_numbers<[1], [0], [0], [1], [0, 0, 1, 1], [], []>} : vector<8x32xf32>, vector<32x30xf32>, vector<8x30xf32> -> vector<8x30xf32>
    %c0_3 = arith.constant 0 : index
    %c0_4 = arith.constant 0 : index
    %3 = vector.load %arg3[%c0_3, %c0_4] : memref<1x30xf32, #tpu.memory_space<vmem>>, vector<1x30xf32>
    %4 = vector.broadcast %3 : vector<1x30xf32> to vector<8x30xf32>
    %5 = arith.addf %2, %4 : vector<8x30xf32>
    %cst_5 = arith.constant 0.000000e+00 : f32
    %6 = vector.broadcast %cst_5 : f32 to vector<8x30xf32>
    %7 = arith.maximumf %5, %6 : vector<8x30xf32>
    %c0_6 = arith.constant 0 : index
    %c0_7 = arith.constant 0 : index
    %8 = vector.load %arg4[%c0_6, %c0_7] : memref<30x4xf32, #tpu.memory_space<vmem>>, vector<30x4xf32>
    %cst_8 = arith.constant dense<0.000000e+00> : vector<8x4xf32>
    %9 = tpu.matmul %7, %8, %cst_8 {dimension_numbers = #tpu.dot_dimension_numbers<[1], [0], [0], [1], [0, 0, 1, 1], [], []>} : vector<8x30xf32>, vector<30x4xf32>, vector<8x4xf32> -> vector<8x4xf32>
    %c0_9 = arith.constant 0 : index
    %c0_10 = arith.constant 0 : index
    %10 = vector.load %arg5[%c0_9, %c0_10] : memref<1x4xf32, #tpu.memory_space<vmem>>, vector<1x4xf32>
    %11 = vector.broadcast %10 : vector<1x4xf32> to vector<8x4xf32>
    %12 = arith.addf %9, %11 : vector<8x4xf32>
    %c0_11 = arith.constant 0 : index
    %c0_12 = arith.constant 0 : index
    %13 = vector.load %arg6[%c0_11, %c0_12] : memref<8x4xf32, #tpu.memory_space<vmem>>, vector<8x4xf32>
    tpu.vector_store %arg6[%c0_11, %c0_12], %12 {strides = array<i32>} : memref<8x4xf32, #tpu.memory_space<vmem>>, vector<8x4xf32>,
    return
  }
  func.func @transform_0(%arg0: i32) -> (i32, i32) {
    %c0_i32 = arith.constant 0 : i32
    %c0_i32_0 = arith.constant 0 : i32
    return %arg0, %c0_i32 : i32, i32
  }
  func.func @transform_1(%arg0: i32) -> (i32, i32) {
    %c0_i32 = arith.constant 0 : i32
    %c0_i32_0 = arith.constant 0 : i32
    %c0_i32_1 = arith.constant 0 : i32
    return %c0_i32, %c0_i32_0 : i32, i32
  }
  func.func @transform_2(%arg0: i32) -> (i32, i32) {
    %c0_i32 = arith.constant 0 : i32
    %c0_i32_0 = arith.constant 0 : i32
    %c0_i32_1 = arith.constant 0 : i32
    return %c0_i32, %c0_i32_0 : i32, i32
  }
  func.func @transform_3(%arg0: i32) -> (i32, i32) {
    %c0_i32 = arith.constant 0 : i32
    %c0_i32_0 = arith.constant 0 : i32
    %c0_i32_1 = arith.constant 0 : i32
    return %c0_i32, %c0_i32_0 : i32, i32
  }
  func.func @transform_4(%arg0: i32) -> (i32, i32) {
    %c0_i32 = arith.constant 0 : i32
    %c0_i32_0 = arith.constant 0 : i32
    %c0_i32_1 = arith.constant 0 : i32
    return %c0_i32, %c0_i32_0 : i32, i32
  }
  func.func @transform_5(%arg0: i32) -> (i32, i32) {
    %c0_i32 = arith.constant 0 : i32
    %c0_i32_0 = arith.constant 0 : i32
    return %arg0, %c0_i32 : i32, i32
  }
}

</mosaic_0001>

<bundles_post_ra>
// kernel: tpu_custom_call.1
= control target key start
LH: loop header
LB: loop body
LE: loop exit
PB: predicated region body
PF: predicated region fallthrough
CT: control target
= control target key end

     0   :  { %10 = vsyncpa [#allocation3], 0  ;;  %s294_s18 = smov [#allocation2]   ;;  %s374_s0 = inlined_call_operand.hbm [shape: f32[8,32], index: 0, kind: input, shape index: {}]   ;;  %s375_s1 = inlined_call_operand.vmem [shape: f32[32,30], index: 1, kind: input, shape index: {}]   ;;  %s376_s2 = inlined_call_operand.vmem [shape: f32[1,30], index: 2, kind: input, shape index: {}]   ;;  %s377_s3 = inlined_call_operand.vmem [shape: f32[30,4], index: 3, kind: input, shape index: {}]   ;;  %s378_s4 = inlined_call_operand.vmem [shape: f32[1,4], index: 4, kind: input, shape index: {}]   ;;  %s379_s5 = inlined_call_operand.vmem [shape: f32[8,4], index: 5, kind: output, shape index: {}]  }
   0x1   :  { %s17_s19 = sshll.u32 %s294_s18, 4  ;;  %s270_s22 = scalar_lea.hbm %s374_s0, 128  ;;  %s18_s19 = int_to_ptr.vmem [resolvable:$true] %s17_s19 }
   0x2   :  { %p271_p0 = scmp.ne.s32.totalorder %s374_s0, %s270_s22  ;;  %p274_p1 = scmp.lt.u32.totalorder %s270_s22, %s374_s0 }
   0x4   :  { %p276_p2 = pnand %p274_p1, %p271_p0 }
   0x6   :  { %279 = shalt.err (!%p276_p2)
}
   0x7   :  { %s280_s27 = scalar_lea.vmem %s18_s19, 128  ;;  %p285_p4 = scmp.lt.s32.totalorder %s18_s19, %s18_s19 }
   0x8   :  { %p281_p3 = scmp.ne.s32.totalorder %s18_s19, %s280_s27  ;;  %p286_p5 = scmp.lt.s32.totalorder %s280_s27, %s280_s27 }
   0xa   :  { %p287_p6 = por %p286_p5, %p285_p4 }
   0xc   :  { %p288_p7 = pnand %p287_p6, %p281_p3 }
   0xe   :  { %291 = shalt.err (!%p288_p7)
}
   0xf   :  { %20 = dma.hbm_to_vmem [thread:$0]  %s374_s0, 128, %s18_s19, [#allocation3]  }
  0x10   :  { %292 = dma.done.wait [#allocation3], 128  }
  0x11   :  { %293 = vsyncadd [#allocation3], 4294967168  ;;  %v295_v0 = vmov 0.0|0.0   ;;  %vm296_vm0 = vmmov 0   ;;  %v297_v1 = vmov 0.0   ;;  %v33_v2 = vld [vmem:[%s375_s1] sm:$0xff] }
  0x12   :  { %252 = vmatprep.subr.bf16.mxu0 %v295_v0  ;;  %238 = vmatprep.mubr.msk.f32.mxu0 %vm296_vm0, %v297_v1  ;;  %v34_v3 = vld [vmem:[%s375_s1 + $0x8] sm:$0xff]  ;;  %v35_v4 = vld [vmem:[%s375_s1 + $0x10] sm:$0xff]  ;;  %v36_v6 = vld [vmem:[%s375_s1 + $0x18] sm:$0xff]  ;;  %vm44_vm1 = vcmask 261120   ;;  %vm134_vm2 = vcmask 1045504   ;;  %vm298_vm3 = vmmov 1  }
  0x13   :  { %258 = vmatprep.subr.bf16.mxu1 %v295_v0  ;;  %249 = vmatprep.mubr.msk.f32.mxu1 %vm296_vm0, %v297_v1  ;;  %v253_v5 = vpack.c.bf16 %v34_v3, %v33_v2  ;;  %v119_v7 = vld [vmem:[%s377_s3] sm:$0xff]  ;;  %v120_v8 = vld [vmem:[%s377_s3 + $0x8] sm:$0xff]  ;;  %v256_v9 = vpack.c.bf16 %v36_v6, %v35_v4  ;;  %v121_v12 = vld [vmem:[%s377_s3 + $0x10] sm:$0xff]  ;;  %vm130_vm5 = vcmask 244736   ;;  %vm208_vm6 = vcmask 31744  }
  0x14   :  { %v259_v10 = vpack.c.bf16 %v120_v8, %v119_v7  ;;  %v32_v11 = vld [vmem:[#allocation2] sm:$0xff]  ;;  %v122_v13 = vld [vmem:[%s377_s3 + $0x18] sm:$0x3f]  ;;  %vm263_vm4 = vmpackc.low %vm134_vm2, %vm298_vm3 }
  0x15   :  { %254 = vmatpush3.bf16.msra.mxu0 %v253_v5  ;;  %v262_v14 = vpack.c.bf16 %v122_v13, %v121_v12  ;;  %v215_v15 = vld [vmem:[%s376_s2] ss:$0 sm:$0xff] }
  0x16   :  { %255 = vmatprep.subr.bf16.mxu0 %v295_v0  ;;  %260 = vmatpush3.bf16.msra.mxu1 %v259_v10  ;;  %v217_v20 = vld [vmem:[%s378_s4] ss:$0 sm:$0xff] }
  0x17   :  { %261 = vmatprep.subr.bf16.mxu1 %v295_v0 }
  0x19   :  { %257 = vmatpush3.bf16.msra.mxu0 %v256_v9 }
  0x1a   :  { %264 = vmatpush3.bf16.msk.msra.mxu1 %vm263_vm4, %v262_v14 }
  0x1c   :  { %239 = vmatmul.mubr.msk.f32.vlgmr.msra.gmra.mrb[0].mxu0 %vm44_vm1, %v32_v11 }
  0xef   :  { %v114_v16 = vpop.f32.mrb[0].mxu0 }
  0xf0   :  { %v115_v17 = vadd.f32 %v215_v15, %v114_v16  ;;  %v240_v18 = vpop.f32.mrb[1].mxu0 }
  0xf2   :  { %v118_v19 = vmax.f32 %v115_v17, 0.0 }
  0xf4   :  { %250 = vmatmul.mubr.msk.f32.vlgmr.msra.gmra.mrb[0].mxu1 %vm130_vm5, %v118_v19 }
 0x1c7   :  { %v204_v21 = vpop.f32.mrb[0].mxu1 }
 0x1c8   :  { %v205_v22 = vadd.f32 %v217_v20, %v204_v21  ;;  %v251_v23 = vpop.f32.mrb[1].mxu1 }
 0x1ca   :  { %209 = vst.msk [vmem:[%s379_s5] sm:$0xff] %vm208_vm6, %v205_v22 }
 0x1cb   :  { %214 = vsyncpa [#allocation3], 1 }

</bundles_post_ra>
